<compile_context>
chip_gen: v6e
topology: v6e:2x2x1
jax: 0.10.0
libtpu: 0.0.40
codegen_flags: <defaults>
</compile_context>

<pallas_src>
import functools
import math

import jax
import jax.numpy as jnp
from jax.experimental import pallas as pl
from jax.experimental.pallas import tpu as pltpu

EPS = 1e-5


# ----------------------------- kernel ---------------------------------------


def self_augment_kernel(x_ref, ln_ref, qkv_add_ref, w_qkv_ref, w_out_ref,
                        b_out_ref, o_ref, *, valid_c):
    Bt, S, Cp = x_ref.shape
    M = Bt * S

    # leading-dim-only reshape (no relayout)
    x2d = x_ref[...].reshape(M, Cp).astype(jnp.float32)

    # LN params: rows of a (4, Cp) array -> free sublane slices
    g1 = ln_ref[0:1, :]
    b1 = ln_ref[1:2, :]
    g2 = ln_ref[2:3, :]
    b2 = ln_ref[3:4, :]

    # channel-validity mask for the padded lanes (no-op multiply when Cp == valid_c)
    lane = jax.lax.broadcasted_iota(jnp.int32, (1, Cp), 1)
    cmask = (lane < valid_c).astype(jnp.float32)
    inv_c = 1.0 / valid_c

    def layer_norm(v, g, b):
        # v has zeros in the padded columns, so sum/valid_c is the true mean.
        mu = jnp.sum(v, axis=-1, keepdims=True) * inv_c
        vc = (v - mu) * cmask
        var = jnp.sum(vc * vc, axis=-1, keepdims=True) * inv_c
        return vc * jax.lax.rsqrt(var + EPS) * g + b        # padded cols stay 0 (g,b pad = 0)

    # ---- LayerNorm 1 (f32) ----
    vis = layer_norm(x2d, g1, b1)                            # (M, Cp)

    # ---- fused QKV projection: one bf16 MXU matmul, f32 accumulation ----
    # qkv_add = [(pe@Wq^T + bq)/sqrt(C) | pe@Wk^T + bk | bv], batch-invariant, (S, 3Cp).
    qkv = jnp.dot(vis.astype(jnp.bfloat16), w_qkv_ref[...],
                  preferred_element_type=jnp.float32)        # (M, 3Cp)
    qkv = qkv.reshape(Bt, S, 3 * Cp) + qkv_add_ref[...]      # broadcast over batch
    q = qkv[:, :, 0 * Cp:1 * Cp]                             # lane-tile-aligned slices
    k = qkv[:, :, 1 * Cp:2 * Cp]
    v = qkv[:, :, 2 * Cp:3 * Cp]

    # ---- single-head scaled dot-product attention (scale folded into Wq) ----
    scores = jnp.einsum("bqc,bkc->bqk",
                        q.astype(jnp.bfloat16), k.astype(jnp.bfloat16),
                        preferred_element_type=jnp.float32)  # (Bt, S, S)
    m = jnp.max(scores, axis=-1, keepdims=True)
    e = jnp.exp(scores - m)
    denom = jnp.sum(e, axis=-1, keepdims=True)
    attn = e * pl.reciprocal(denom, approx=True)             # EUP reciprocal, frees VALU
    ctx = jnp.einsum("bqk,bkc->bqc",
                     attn.astype(jnp.bfloat16), v.astype(jnp.bfloat16),
                     preferred_element_type=jnp.float32)     # (Bt, S, Cp)

    # ---- out-projection + LayerNorm 2 + residual ----
    out = jnp.dot(ctx.reshape(M, Cp).astype(jnp.bfloat16), w_out_ref[...],
                  preferred_element_type=jnp.float32) + b_out_ref[...]
    y = x2d + layer_norm(out, g2, b2)
    o_ref[...] = y.reshape(Bt, S, Cp).astype(o_ref.dtype)    # lane-dense, unmasked store


# ----------------------------- param prep -----------------------------------


def _round_up(n, m):
    return ((n + m - 1) // m) * m


def positional_encoding(seq_len, d_model):
    pos = jnp.arange(seq_len, dtype=jnp.float32)[:, None]
    div = jnp.exp(jnp.arange(0, d_model, 2, dtype=jnp.float32)
                  * (-math.log(10000.0) / d_model))
    pe = jnp.zeros((seq_len, d_model), dtype=jnp.float32)
    pe = pe.at[:, 0::2].set(jnp.sin(pos * div))
    pe = pe.at[:, 1::2].set(jnp.cos(pos * div))
    return pe


def prepare_params(tparams, pe, lane=128):
    """Torch-style params -> lane-padded, fused kernel operand layout (bf16 weights)."""
    g1, b1, in_w, in_b, out_w, out_b, g2, b2 = tparams
    C = g1.shape[0]
    S = pe.shape[0]
    Cp = _round_up(C, lane)
    pc = Cp - C
    scale = 1.0 / math.sqrt(C)

    pad_vec = lambda a: jnp.pad(a, (0, pc))
    pad_cols = lambda a: jnp.pad(a, ((0, 0), (0, pc)))
    pad_rows = lambda a: jnp.pad(a, ((0, pc), (0, 0)))

    # LN params as rows (gamma1 / beta1 / gamma2 / beta2), padded lanes are zero.
    ln_params = jnp.stack([pad_vec(g1), pad_vec(b1), pad_vec(g2), pad_vec(b2)],
                          axis=0).astype(jnp.float32)                     # (4, Cp)

    wq, wk, wv = in_w[0:C], in_w[C:2 * C], in_w[2 * C:3 * C]
    bq, bk, bv = in_b[0:C], in_b[C:2 * C], in_b[2 * C:3 * C]

    # Fused, segment-padded in-projection; 1/sqrt(C) folded into the Q segment.
    w_qkv_t = jnp.concatenate(
        [pad_cols(wq.T * scale), pad_cols(wk.T), pad_cols(wv.T)], axis=1)  # (C, 3Cp)
    w_qkv_t = pad_rows(w_qkv_t).astype(jnp.bfloat16)                       # (Cp, 3Cp)

    # Batch-invariant additive term (PE projections + biases), same padded layout.
    qkv_add = jnp.concatenate(
        [pad_cols((pe @ wq.T + bq) * scale),
         pad_cols(pe @ wk.T + bk),
         pad_cols(jnp.broadcast_to(bv, (S, C)))], axis=1).astype(jnp.float32)  # (S, 3Cp)

    w_out_t = pad_rows(pad_cols(out_w.T)).astype(jnp.bfloat16)             # (Cp, Cp)
    b_out2d = pad_vec(out_b).reshape(1, Cp).astype(jnp.float32)            # (1, Cp)
    return ln_params, qkv_add, w_qkv_t, w_out_t, b_out2d


# ----------------------------- wrapper ---------------------------------------


def _vmem_capacity_bytes():
    try:
        cap = getattr(pltpu.get_tpu_info(), "vmem_capacity_bytes", None)
        if cap:
            return int(cap)
    except Exception:
        pass
    return 64 * 1024 * 1024        # conservative default (v7x per-core VMEM)


def _vmem_bytes_estimate(bt, S, Cp):
    M = bt * S
    io_tiles = 2 * 2 * M * Cp * 4                      # x/out tiles, double-buffered f32
    qkv = M * 3 * Cp * (4 + 2)                         # f32 slab + bf16 q/k/v copies
    scores = 3 * bt * S * S * 4                        # scores / exp / attn
    ctx = M * Cp * (4 + 2)
    ln_tmp = 3 * M * Cp * 4
    weights = 2 * ((Cp * 3 * Cp + Cp * Cp) * 2 + (S * 3 * Cp + 5 * Cp) * 4)
    return io_tiles + qkv + scores + ctx + ln_tmp + weights


def _choose_block_b(B, S, Cp, vmem_cap):
    # Largest divisor of B such that (a) the grid keeps >= 2 "parallel" steps when
    # B >= 2 (so both v7x TensorCores get work), and (b) the estimated working set
    # stays under ~half of VMEM (scores scale with S^2, qkv slab with block_b*S*3Cp).
    best = 1
    for bt in range(1, B + 1):
        if B % bt:
            continue
        if B >= 2 and B // bt < 2:
            continue
        if bt * S > 1024:                              # keep MXU M-tiles modest
            continue
        if _vmem_bytes_estimate(bt, S, Cp) > vmem_cap // 2:
            continue
        best = bt
    return best


def self_augment(x, kparams, block_b=None):
    B, S, C = x.shape
    ln_params, qkv_add, w_qkv_t, w_out_t, b_out2d = kparams
    Cp = qkv_add.shape[1] // 3

    # lane-dense HBM layout: pad channels to a multiple of 128 (no-op when Cp == C)
    x_p = x if Cp == C else jnp.pad(x, ((0, 0), (0, 0), (0, Cp - C)))

    vmem_cap = _vmem_capacity_bytes()
    if block_b is None:
        block_b = _choose_block_b(B, S, Cp, vmem_cap)
    grid = (B // block_b,)

    cost = pl.CostEstimate(
        flops=2 * B * S * (4 * Cp * Cp + 2 * S * Cp),
        transcendentals=B * S * S,
        bytes_accessed=(2 * B * S * Cp * 4
                        + (Cp * 3 * Cp + Cp * Cp) * 2
                        + (S * 3 * Cp + 5 * Cp) * 4),
    )

    kernel = functools.partial(self_augment_kernel, valid_c=C)

    out_p = pl.pallas_call(
        kernel,
        out_shape=jax.ShapeDtypeStruct((B, S, Cp), x.dtype),
        grid_spec=pltpu.PrefetchScalarGridSpec(
            num_scalar_prefetch=0,
            grid=grid,
            in_specs=[
                pl.BlockSpec((block_b, S, Cp), lambda b: (b, 0, 0)),   # x (lane-dense)
                pl.BlockSpec((4, Cp), lambda b: (0, 0)),               # LN params (rows)
                pl.BlockSpec((S, 3 * Cp), lambda b: (0, 0)),           # PE/bias add (untiled)
                pl.BlockSpec((Cp, 3 * Cp), lambda b: (0, 0)),          # fused Wqkv^T
                pl.BlockSpec((Cp, Cp), lambda b: (0, 0)),              # Wout^T
                pl.BlockSpec((1, Cp), lambda b: (0, 0)),               # bout
            ],
            out_specs=pl.BlockSpec((block_b, S, Cp), lambda b: (b, 0, 0)),
        ),
        compiler_params=pltpu.CompilerParams(
            dimension_semantics=("parallel",),
            vmem_limit_bytes=max(32 * 1024 * 1024,
                                 min(vmem_cap * 3 // 4, 96 * 1024 * 1024)),
        ),
        cost_estimate=cost,
    )(x_p, ln_params, qkv_add, w_qkv_t, w_out_t, b_out2d)

    return out_p if Cp == C else out_p[:, :, :C]


# ----------------------------- reference & test ------------------------------


def _layer_norm(x, gamma, beta):
    x = x.astype(jnp.float32)
    mu = jnp.mean(x, axis=-1, keepdims=True)
    var = jnp.mean((x - mu) ** 2, axis=-1, keepdims=True)
    return (x - mu) * jax.lax.rsqrt(var + EPS) * gamma + beta


def reference(x, tparams, pe):
    """Pure-JAX reference with PyTorch forward semantics; matmul operands cast to
    bf16 (f32 accumulation) to mirror the kernel's MXU precision."""
    g1, b1, in_w, in_b, out_w, out_b, g2, b2 = tparams
    C = x.shape[-1]

    def mm(a, b, eq):
        return jnp.einsum(eq, a.astype(jnp.bfloat16), b.astype(jnp.bfloat16),
                          preferred_element_type=jnp.float32)

    vis = _layer_norm(x, g1, b1)
    qk = vis + pe[None]
    q = mm(qk, in_w[0:C].T, "bsc,cd->bsd") + in_b[0:C]
    k = mm(qk, in_w[C:2 * C].T, "bsc,cd->bsd") + in_b[C:2 * C]
    v = mm(vis, in_w[2 * C:3 * C].T, "bsc,cd->bsd") + in_b[2 * C:3 * C]
    scores = mm(q, k, "bqc,bkc->bqk") / math.sqrt(C)
    attn = jax.nn.softmax(scores, axis=-1)
    ctx = mm(attn, v, "bqk,bkc->bqc")
    out = mm(ctx, out_w.T, "bsc,cd->bsd") + out_b
    return x + _layer_norm(out, g2, b2)


def make_params(key, C):
    ks = jax.random.split(key, 8)
    g1 = 1.0 + 0.1 * jax.random.normal(ks[0], (C,), jnp.float32)
    b1 = 0.1 * jax.random.normal(ks[1], (C,), jnp.float32)
    g2 = 1.0 + 0.1 * jax.random.normal(ks[2], (C,), jnp.float32)
    b2 = 0.1 * jax.random.normal(ks[3], (C,), jnp.float32)
    in_w = 0.05 * jax.random.normal(ks[4], (3 * C, C), jnp.float32)
    in_b = 0.05 * jax.random.normal(ks[5], (3 * C,), jnp.float32)
    out_w = 0.05 * jax.random.normal(ks[6], (C, C), jnp.float32)
    out_b = 0.05 * jax.random.normal(ks[7], (C,), jnp.float32)
    return g1, b1, in_w, in_b, out_w, out_b, g2, b2


if __name__ == "__main__":
    B, S, C = 2, 8, 32
    key = jax.random.PRNGKey(0)
    kx, kp = jax.random.split(key)
    x = jax.random.normal(kx, (B, S, C), dtype=jnp.float32)

    tparams = make_params(kp, C)
    pe = positional_encoding(S, C)
    kparams = prepare_params(tparams, pe)

    out = jax.block_until_ready(self_augment(x, kparams))
    ref = reference(x, tparams, pe)

    assert out.shape == (B, S, C)
    err = float(jnp.max(jnp.abs(out - ref)))
    assert err < 2e-2, f"max abs diff {err}"
    print("KERNEL_OK")
</pallas_src>

<mosaic_0001>
module attributes {stable_mosaic.version = 11 : i64} {
  func.func @self_augment_kernel(%arg0: i32, %arg1: memref<1x8x128xf32, #tpu.memory_space<vmem>>, %arg2: memref<4x128xf32, #tpu.memory_space<vmem>>, %arg3: memref<8x384xf32, #tpu.memory_space<vmem>>, %arg4: memref<128x384xbf16, #tpu.memory_space<vmem>>, %arg5: memref<128x128xbf16, #tpu.memory_space<vmem>>, %arg6: memref<1x128xf32, #tpu.memory_space<vmem>>, %arg7: memref<1x8x128xf32, #tpu.memory_space<vmem>>) attributes {dimension_semantics = [#tpu.dimension_semantics<parallel>], iteration_bounds = array<i64: 2>, scalar_prefetch = 0 : i64, scratch_operands = 0 : i64, tpu.core_type = #tpu.core_type<tc>, window_params = [{transform_indices = @transform_0, window_bounds = array<i64: 1, 8, 128>}, {pipeline_mode = #tpu.pipeline_mode<synchronous>, transform_indices = @transform_1, window_bounds = array<i64: 4, 128>}, {pipeline_mode = #tpu.pipeline_mode<synchronous>, transform_indices = @transform_2, window_bounds = array<i64: 8, 384>}, {pipeline_mode = #tpu.pipeline_mode<synchronous>, transform_indices = @transform_3, window_bounds = array<i64: 128, 384>}, {pipeline_mode = #tpu.pipeline_mode<synchronous>, transform_indices = @transform_4, window_bounds = array<i64: 128, 128>}, {pipeline_mode = #tpu.pipeline_mode<synchronous>, transform_indices = @transform_5, window_bounds = array<i64: 1, 128>}, {transform_indices = @transform_6, window_bounds = array<i64: 1, 8, 128>}]} {
    %c0 = arith.constant 0 : index
    %c0_0 = arith.constant 0 : index
    %c0_1 = arith.constant 0 : index
    %0 = vector.load %arg1[%c0, %c0_0, %c0_1] : memref<1x8x128xf32, #tpu.memory_space<vmem>>, vector<1x8x128xf32>
    %1 = vector.shape_cast %0 : vector<1x8x128xf32> to vector<8x128xf32>
    %c0_2 = arith.constant 0 : index
    %c0_3 = arith.constant 0 : index
    %2 = vector.load %arg2[%c0_2, %c0_3] : memref<4x128xf32, #tpu.memory_space<vmem>>, vector<1x128xf32>
    %c1 = arith.constant 1 : index
    %c0_4 = arith.constant 0 : index
    %3 = vector.load %arg2[%c1, %c0_4] : memref<4x128xf32, #tpu.memory_space<vmem>>, vector<1x128xf32>
    %c2 = arith.constant 2 : index
    %c0_5 = arith.constant 0 : index
    %4 = vector.load %arg2[%c2, %c0_5] : memref<4x128xf32, #tpu.memory_space<vmem>>, vector<1x128xf32>
    %c3 = arith.constant 3 : index
    %c0_6 = arith.constant 0 : index
    %5 = vector.load %arg2[%c3, %c0_6] : memref<4x128xf32, #tpu.memory_space<vmem>>, vector<1x128xf32>
    %6 = tpu.iota {dimensions = array<i32: 1>} : vector<1x128xi32>
    %c32_i32 = arith.constant 32 : i32
    %7 = vector.broadcast %c32_i32 : i32 to vector<1x128xi32>
    %8 = arith.cmpi slt, %6, %7 : vector<1x128xi32>
    %9 = arith.extui %8 : vector<1x128xi1> to vector<1x128xi32>
    %10 = arith.sitofp %9 : vector<1x128xi32> to vector<1x128xf32>
    %cst = arith.constant dense<0.000000e+00> : vector<8xf32>
    %11 = vector.multi_reduction <add>, %1, %cst [1] : vector<8x128xf32> to vector<8xf32>
    %12 = vector.shape_cast %11 : vector<8xf32> to vector<8x1xf32>
    %cst_7 = arith.constant 3.125000e-02 : f32
    %13 = vector.broadcast %cst_7 : f32 to vector<8x1xf32>
    %14 = arith.mulf %12, %13 : vector<8x1xf32>
    %15 = vector.broadcast %14 : vector<8x1xf32> to vector<8x128xf32>
    %16 = arith.subf %1, %15 : vector<8x128xf32>
    %17 = vector.broadcast %10 : vector<1x128xf32> to vector<8x128xf32>
    %18 = arith.mulf %16, %17 : vector<8x128xf32>
    %19 = arith.mulf %18, %18 : vector<8x128xf32>
    %cst_8 = arith.constant dense<0.000000e+00> : vector<8xf32>
    %20 = vector.multi_reduction <add>, %19, %cst_8 [1] : vector<8x128xf32> to vector<8xf32>
    %21 = vector.shape_cast %20 : vector<8xf32> to vector<8x1xf32>
    %cst_9 = arith.constant 3.125000e-02 : f32
    %22 = vector.broadcast %cst_9 : f32 to vector<8x1xf32>
    %23 = arith.mulf %21, %22 : vector<8x1xf32>
    %cst_10 = arith.constant 9.99999974E-6 : f32
    %24 = vector.broadcast %cst_10 : f32 to vector<8x1xf32>
    %25 = arith.addf %23, %24 : vector<8x1xf32>
    %26 = math.rsqrt %25 : vector<8x1xf32>
    %27 = vector.broadcast %26 : vector<8x1xf32> to vector<8x128xf32>
    %28 = arith.mulf %18, %27 : vector<8x128xf32>
    %29 = vector.broadcast %2 : vector<1x128xf32> to vector<8x128xf32>
    %30 = arith.mulf %28, %29 : vector<8x128xf32>
    %31 = vector.broadcast %3 : vector<1x128xf32> to vector<8x128xf32>
    %32 = arith.addf %30, %31 : vector<8x128xf32>
    %33 = arith.truncf %32 : vector<8x128xf32> to vector<8x128xbf16>
    %c0_11 = arith.constant 0 : index
    %c0_12 = arith.constant 0 : index
    %34 = vector.load %arg4[%c0_11, %c0_12] : memref<128x384xbf16, #tpu.memory_space<vmem>>, vector<128x384xbf16>
    %cst_13 = arith.constant dense<0.000000e+00> : vector<8x384xf32>
    %35 = tpu.matmul %33, %34, %cst_13 {dimension_numbers = #tpu.dot_dimension_numbers<[1], [0], [0], [1], [0, 0, 1, 1], [], []>} : vector<8x128xbf16>, vector<128x384xbf16>, vector<8x384xf32> -> vector<8x384xf32>
    %36 = vector.shape_cast %35 : vector<8x384xf32> to vector<1x8x384xf32>
    %c0_14 = arith.constant 0 : index
    %c0_15 = arith.constant 0 : index
    %37 = vector.load %arg3[%c0_14, %c0_15] : memref<8x384xf32, #tpu.memory_space<vmem>>, vector<8x384xf32>
    %38 = vector.shape_cast %37 : vector<8x384xf32> to vector<1x8x384xf32>
    %39 = arith.addf %36, %38 : vector<1x8x384xf32>
    %40 = vector.extract_strided_slice %39 {offsets = [0, 0, 0], sizes = [1, 8, 128], strides = [1, 1, 1]} : vector<1x8x384xf32> to vector<1x8x128xf32>
    %41 = vector.extract_strided_slice %39 {offsets = [0, 0, 128], sizes = [1, 8, 128], strides = [1, 1, 1]} : vector<1x8x384xf32> to vector<1x8x128xf32>
    %42 = vector.extract_strided_slice %39 {offsets = [0, 0, 256], sizes = [1, 8, 128], strides = [1, 1, 1]} : vector<1x8x384xf32> to vector<1x8x128xf32>
    %43 = arith.truncf %40 : vector<1x8x128xf32> to vector<1x8x128xbf16>
    %44 = arith.truncf %41 : vector<1x8x128xf32> to vector<1x8x128xbf16>
    "tpu.trace_start"() <{level = 10 : i32, message = "bqc,bkc->bqk"}> : () -> ()
    %cst_16 = arith.constant dense<0.000000e+00> : vector<1x8x8xf32>
    %45 = tpu.matmul %43, %44, %cst_16 {dimension_numbers = #tpu.dot_dimension_numbers<[2], [2], [1], [1], [0, 0, 0, 1, 1, 1], [0], [0]>} : vector<1x8x128xbf16>, vector<1x8x128xbf16>, vector<1x8x8xf32> -> vector<1x8x8xf32>
    "tpu.trace_stop"() : () -> ()
    %cst_17 = arith.constant dense<0xFF800000> : vector<1x8xf32>
    %46 = vector.multi_reduction <maximumf>, %45, %cst_17 [2] : vector<1x8x8xf32> to vector<1x8xf32>
    %47 = vector.shape_cast %46 : vector<1x8xf32> to vector<1x8x1xf32>
    %48 = vector.broadcast %47 : vector<1x8x1xf32> to vector<1x8x8xf32>
    %49 = arith.subf %45, %48 : vector<1x8x8xf32>
    %50 = math.exp %49 : vector<1x8x8xf32>
    %cst_18 = arith.constant dense<0.000000e+00> : vector<1x8xf32>
    %51 = vector.multi_reduction <add>, %50, %cst_18 [2] : vector<1x8x8xf32> to vector<1x8xf32>
    %52 = vector.shape_cast %51 : vector<1x8xf32> to vector<1x8x1xf32>
    %53 = tpu.reciprocal %52 {approx = true} : vector<1x8x1xf32> -> vector<1x8x1xf32>
    %54 = vector.broadcast %53 : vector<1x8x1xf32> to vector<1x8x8xf32>
    %55 = arith.mulf %50, %54 : vector<1x8x8xf32>
    %56 = arith.truncf %55 : vector<1x8x8xf32> to vector<1x8x8xbf16>
    %57 = arith.truncf %42 : vector<1x8x128xf32> to vector<1x8x128xbf16>
    "tpu.trace_start"() <{level = 10 : i32, message = "bqk,bkc->bqc"}> : () -> ()
    %cst_19 = arith.constant dense<0.000000e+00> : vector<1x8x128xf32>
    %58 = tpu.matmul %56, %57, %cst_19 {dimension_numbers = #tpu.dot_dimension_numbers<[2], [1], [1], [2], [0, 0, 0, 1, 1, 2], [0], [0]>} : vector<1x8x8xbf16>, vector<1x8x128xbf16>, vector<1x8x128xf32> -> vector<1x8x128xf32>
    "tpu.trace_stop"() : () -> ()
    %59 = vector.shape_cast %58 : vector<1x8x128xf32> to vector<8x128xf32>
    %60 = arith.truncf %59 : vector<8x128xf32> to vector<8x128xbf16>
    %c0_20 = arith.constant 0 : index
    %c0_21 = arith.constant 0 : index
    %61 = vector.load %arg5[%c0_20, %c0_21] : memref<128x128xbf16, #tpu.memory_space<vmem>>, vector<128x128xbf16>
    %cst_22 = arith.constant dense<0.000000e+00> : vector<8x128xf32>
    %62 = tpu.matmul %60, %61, %cst_22 {dimension_numbers = #tpu.dot_dimension_numbers<[1], [0], [0], [1], [0, 0, 1, 1], [], []>} : vector<8x128xbf16>, vector<128x128xbf16>, vector<8x128xf32> -> vector<8x128xf32>
    %c0_23 = arith.constant 0 : index
    %c0_24 = arith.constant 0 : index
    %63 = vector.load %arg6[%c0_23, %c0_24] : memref<1x128xf32, #tpu.memory_space<vmem>>, vector<1x128xf32>
    %64 = vector.broadcast %63 : vector<1x128xf32> to vector<8x128xf32>
    %65 = arith.addf %62, %64 : vector<8x128xf32>
    %cst_25 = arith.constant dense<0.000000e+00> : vector<8xf32>
    %66 = vector.multi_reduction <add>, %65, %cst_25 [1] : vector<8x128xf32> to vector<8xf32>
    %67 = vector.shape_cast %66 : vector<8xf32> to vector<8x1xf32>
    %cst_26 = arith.constant 3.125000e-02 : f32
    %68 = vector.broadcast %cst_26 : f32 to vector<8x1xf32>
    %69 = arith.mulf %67, %68 : vector<8x1xf32>
    %70 = vector.broadcast %69 : vector<8x1xf32> to vector<8x128xf32>
    %71 = arith.subf %65, %70 : vector<8x128xf32>
    %72 = vector.broadcast %10 : vector<1x128xf32> to vector<8x128xf32>
    %73 = arith.mulf %71, %72 : vector<8x128xf32>
    %74 = arith.mulf %73, %73 : vector<8x128xf32>
    %cst_27 = arith.constant dense<0.000000e+00> : vector<8xf32>
    %75 = vector.multi_reduction <add>, %74, %cst_27 [1] : vector<8x128xf32> to vector<8xf32>
    %76 = vector.shape_cast %75 : vector<8xf32> to vector<8x1xf32>
    %cst_28 = arith.constant 3.125000e-02 : f32
    %77 = vector.broadcast %cst_28 : f32 to vector<8x1xf32>
    %78 = arith.mulf %76, %77 : vector<8x1xf32>
    %cst_29 = arith.constant 9.99999974E-6 : f32
    %79 = vector.broadcast %cst_29 : f32 to vector<8x1xf32>
    %80 = arith.addf %78, %79 : vector<8x1xf32>
    %81 = math.rsqrt %80 : vector<8x1xf32>
    %82 = vector.broadcast %81 : vector<8x1xf32> to vector<8x128xf32>
    %83 = arith.mulf %73, %82 : vector<8x128xf32>
    %84 = vector.broadcast %4 : vector<1x128xf32> to vector<8x128xf32>
    %85 = arith.mulf %83, %84 : vector<8x128xf32>
    %86 = vector.broadcast %5 : vector<1x128xf32> to vector<8x128xf32>
    %87 = arith.addf %85, %86 : vector<8x128xf32>
    %88 = arith.addf %1, %87 : vector<8x128xf32>
    %89 = vector.shape_cast %88 : vector<8x128xf32> to vector<1x8x128xf32>
    %c0_30 = arith.constant 0 : index
    %c0_31 = arith.constant 0 : index
    %c0_32 = arith.constant 0 : index
    %90 = vector.load %arg7[%c0_30, %c0_31, %c0_32] : memref<1x8x128xf32, #tpu.memory_space<vmem>>, vector<1x8x128xf32>
    tpu.vector_store %arg7[%c0_30, %c0_31, %c0_32], %89 {strides = array<i32>} : memref<1x8x128xf32, #tpu.memory_space<vmem>>, vector<1x8x128xf32>,
    return
  }
  func.func @transform_0(%arg0: i32) -> (i32, i32, i32) {
    %c0_i32 = arith.constant 0 : i32
    %c0_i32_0 = arith.constant 0 : i32
    %c0_i32_1 = arith.constant 0 : i32
    return %arg0, %c0_i32, %c0_i32_0 : i32, i32, i32
  }
  func.func @transform_1(%arg0: i32) -> (i32, i32) {
    %c0_i32 = arith.constant 0 : i32
    %c0_i32_0 = arith.constant 0 : i32
    %c0_i32_1 = arith.constant 0 : i32
    return %c0_i32, %c0_i32_0 : i32, i32
  }
  func.func @transform_2(%arg0: i32) -> (i32, i32) {
    %c0_i32 = arith.constant 0 : i32
    %c0_i32_0 = arith.constant 0 : i32
    %c0_i32_1 = arith.constant 0 : i32
    return %c0_i32, %c0_i32_0 : i32, i32
  }
  func.func @transform_3(%arg0: i32) -> (i32, i32) {
    %c0_i32 = arith.constant 0 : i32
    %c0_i32_0 = arith.constant 0 : i32
    %c0_i32_1 = arith.constant 0 : i32
    return %c0_i32, %c0_i32_0 : i32, i32
  }
  func.func @transform_4(%arg0: i32) -> (i32, i32) {
    %c0_i32 = arith.constant 0 : i32
    %c0_i32_0 = arith.constant 0 : i32
    %c0_i32_1 = arith.constant 0 : i32
    return %c0_i32, %c0_i32_0 : i32, i32
  }
  func.func @transform_5(%arg0: i32) -> (i32, i32) {
    %c0_i32 = arith.constant 0 : i32
    %c0_i32_0 = arith.constant 0 : i32
    %c0_i32_1 = arith.constant 0 : i32
    return %c0_i32, %c0_i32_0 : i32, i32
  }
  func.func @transform_6(%arg0: i32) -> (i32, i32, i32) {
    %c0_i32 = arith.constant 0 : i32
    %c0_i32_0 = arith.constant 0 : i32
    %c0_i32_1 = arith.constant 0 : i32
    return %arg0, %c0_i32, %c0_i32_0 : i32, i32, i32
  }
}

</mosaic_0001>

<bundles_post_ra>
// kernel: tpu_custom_call.1
= control target key start
LH: loop header
LB: loop body
LE: loop exit
PB: predicated region body
PF: predicated region fallthrough
CT: control target
= control target key end

     0   :  { %s1741_s0 = inlined_call_operand.hbm [shape: f32[2,8,128], index: 0, kind: input, shape index: {}]   ;;  %s1742_s1 = inlined_call_operand.hbm [shape: f32[4,128], index: 1, kind: input, shape index: {}]   ;;  %s1743_s2 = inlined_call_operand.hbm [shape: f32[8,384], index: 2, kind: input, shape index: {}]   ;;  %s1744_s3 = inlined_call_operand.hbm [shape: bf16[128,384], index: 3, kind: input, shape index: {}]   ;;  %s1745_s4 = inlined_call_operand.hbm [shape: bf16[128,128], index: 4, kind: input, shape index: {}]   ;;  %s1746_s5 = inlined_call_operand.vmem [shape: f32[1,128], index: 5, kind: input, shape index: {}]   ;;  %s1747_s6 = inlined_call_operand.hbm [shape: f32[2,8,128], index: 6, kind: output, shape index: {}]  }
   0x1   :  { %1752 = sst [smem:[#allocation16_spill]] %s1742_s1 }
   0x2   :  { %11 = vsyncpa [#allocation3], 0 }
   0x3   :  { %13 = vsyncpa [#allocation3 + $0x1], 0 }
   0x4   :  { %14 = vsyncpa [#allocation6], 0 }
   0x5   :  { %15 = vsyncpa [#allocation9], 0 }
   0x6   :  { %16 = vsyncpa [#allocation4], 0 }
   0x7   :  { %18 = vsyncpa [#allocation4 + $0x1], 0  ;;  %s1492_s21 = smov 0   ;;  %s1494_s22 = smov 0  }
   0x8   :  { %s1496_s23 = smov 0   ;;  %s1498_s24 = smov 0  }
   0x9 LB: > { %s1444_s25 = smov [#allocation5]   ;;  %s1513_s27 = sadd.s32 4294967295, %s1442_s24   ;;  %s1442_s24 = sphi %s1498_s24, %s1773_s24   ;;  %s1438_s23 = sphi %s1496_s23, %s1772_s23   ;;  %s1434_s22 = sphi %s1494_s22, %s1771_s22   ;;  %s1430_s21 = sphi %s1492_s21, %s1770_s21  }
   0xa   : > { %s199_s26 = sshll.u32 %s1444_s25, 4  ;;  %p964_p0 = scmp.ge.s32.totalorder %s1442_s24, 1  ;;  %s200_s26 = int_to_ptr.vmem [resolvable:$true] %s199_s26 }
   0xb   : > { %p1748_p1 = scmp.eq.s32.totalorder %s1513_s27, 0  ;;  %p186_p2 = scmp.lt.s32.totalorder %s1442_s24, 3 }
   0xc   : > { %s1445_s29 = smov [#allocation8]   ;;  %s1446_s8 = smov [#allocation7]  }
   0xd   : > { %p1518_p3 = pnand %p964_p0, %p186_p2  ;;  %s220_s30 = sshll.u32 %s1445_s29, 4  ;;  %s1525_s30 = int_to_ptr.vmem [resolvable:$true] %s220_s30 }
   0xe   : > { %s210_s9 = sshll.u32 %s1446_s8, 4  ;;  %s1249_s10 = scalar_lea.vmem %s200_s26, 64  ;;  %s1533_s9 = int_to_ptr.vmem [resolvable:$true] %s210_s9 }
   0xf   : > { %s1753_s28 = scalar_select %p1518_p3, 1, 0 }
  0x10   : > { %p1116_p5 = pneg %p1518_p3  ;;  %p1250_p8 = scmp.ne.s32.totalorder %s200_s26, %s1249_s10 }
  0x11   : > { %p1257_p11 = scmp.lt.s32.totalorder %s200_s26, %s200_s26  ;;  %p1258_p12 = scmp.lt.s32.totalorder %s1249_s10, %s1249_s10 }
  0x12   : > { %p1529_p6 = pnand %p1116_p5, %p1748_p1 }
  0x13   : > { %p1259_p13 = por %p1258_p12, %p1257_p11 }
  0x14   : > { %p1240_p7 = pneg %p1529_p6 }
  0x16   : > { %p1252_p9 = pnand %p1250_p8, %p1240_p7 }
  0x18   : > { %p1253_p10 = pneg %p1252_p9 }
  0x1a   : > { %p1260_p0 = pnand %p1259_p13, %p1253_p10 }
  0x1c   : > { %1263 = shalt.err (!%p1260_p0)
}
  0x1d   : > { %s1755_s1 = sld [smem:[#allocation16_spill]]  ;;  %s1275_s13 = scalar_lea.vmem %s1525_s30, 3072 }
  0x1e   : > { %p1276_p2 = scmp.ne.s32.totalorder %s1525_s30, %s1275_s13  ;;  %p1283_p9 = scmp.lt.s32.totalorder %s1525_s30, %s1525_s30 }
  0x1f   : > { %p1284_p10 = scmp.lt.s32.totalorder %s1275_s13, %s1275_s13 }
  0x20   : > { %p1278_p5 = pnand %p1276_p2, %p1240_p7 }
  0x21   : > { %p1285_p11 = por %p1284_p10, %p1283_p9 }
  0x22   : > { %p1279_p8 = pneg %p1278_p5 }
  0x23   : > { %1119 = dma.hbm_to_vmem [thread:$0]  (!%p1529_p6), %s1755_s1, 64, %s200_s26, [#allocation6]  }
  0x24   : > { %p1286_p12 = pnand %p1285_p11, %p1279_p8 }
  0x26   : > { %1289 = shalt.err (!%p1286_p12)
}
  0x27   : > { %s1447_s14 = smov 192   ;;  %s1448_s15 = smov 12  }
  0x28   : > { %1125 = dma.hbm_to_vmem [thread:$0]  (!%p1529_p6), %s1744_s3, 3072, %s1525_s30, [#allocation9], %s1447_s14, %s1447_s14, %s1448_s15  }
  0x29   : > { %s1301_s18 = scalar_lea.vmem %s1533_s9, 384  ;;  %p1309_p5 = scmp.lt.s32.totalorder %s1533_s9, %s1533_s9 }
  0x2a   : > { %p1302_p13 = scmp.ne.s32.totalorder %s1533_s9, %s1301_s18  ;;  %p1310_p8 = scmp.lt.s32.totalorder %s1301_s18, %s1301_s18 }
  0x2c   : > { %p1304_p0 = pnand %p1302_p13, %p1240_p7  ;;  %p1311_p9 = por %p1310_p8, %p1309_p5 }
  0x2e   : > { %p1305_p2 = pneg %p1304_p0 }
  0x30   : > { %p1312_p10 = pnand %p1311_p9, %p1305_p2 }
  0x32   : > { %1315 = shalt.err (!%p1312_p10)
}
  0x33   : > { %1122 = dma.hbm_to_vmem [thread:$0]  (!%p1529_p6), %s1743_s2, 384, %s1533_s9, [#allocation6]  }
  0x34   : > { %s1449_s25 = smov [#allocation10]  }
  0x35   : > { %s233_s26 = sshll.u32 %s1449_s25, 4  ;;  %s234_s26 = int_to_ptr.vmem [resolvable:$true] %s233_s26 }
  0x36   : > { %s1327_s29 = scalar_lea.vmem %s234_s26, 1024  ;;  %p1335_p0 = scmp.lt.s32.totalorder %s234_s26, %s234_s26 }
  0x37   : > { %p1328_p11 = scmp.ne.s32.totalorder %s234_s26, %s1327_s29  ;;  %p1336_p2 = scmp.lt.s32.totalorder %s1327_s29, %s1327_s29 }
  0x39   : > { %p1330_p12 = pnand %p1328_p11, %p1240_p7  ;;  %p1337_p5 = por %p1336_p2, %p1335_p0 }
  0x3b   : > { %p1331_p13 = pneg %p1330_p12 }
  0x3d   : > { %p1338_p8 = pnand %p1337_p5, %p1331_p13 }
  0x3f   : > { %1341 = shalt.err (!%p1338_p8)
}
  0x40   : > { %s1450_s30 = smov 64   ;;  %s1451_s8 = smov 4  }
  0x41   : > { %1128 = dma.hbm_to_vmem [thread:$0]  (!%p1529_p6), %s1745_s4, 1024, %s234_s26, [#allocation9], %s1450_s30, %s1450_s30, %s1451_s8  }
  0x42   : > { %s963_s11 = sadd.s32 4294967294, %s1442_s24   ;;  %s1581_s12 = sadd.s32 1, %s1442_s24  }
  0x43   : > { %s28_s13 = ssub.s32 %s1442_s24, %s1581_s12  ;;  %s31_s14 = sadd.s32 1, %s1438_s23 }
  0x44   : > { %p29_p7 = scmp.eq.s32.totalorder %s28_s13, 0  ;;  %p38_p9 = scmp.ne.s32.totalorder %s1438_s23, %s1434_s22 }
  0x45   : > { %p39_p10 = scmp.eq.s32.totalorder %s1442_s24, 0  ;;  %p44_p11 = scmp.ne.s32.totalorder %s1434_s22, %s1430_s21 }
  0x46   : > { %s1592_s15 = scalar_select %p29_p7, %s1438_s23, %s31_s14  }
  0x47   : > { %p1594_p12 = por %p39_p10, %p38_p9  ;;  %p1600_p6 = por %p1748_p1, %p44_p11 }
  0x48   : > { %p173_p13 = scmp.eq.s32.totalorder %s1513_s27, 1  ;;  %p179_p0 = scmp.eq.s32.totalorder %s963_s11, 1 }
  0x49   : > { %s1757_s16 = scalar_select %p1600_p6, 1, 0 }
  0x4a   : > { %p1141_p2 = scmp.lt.s32.totalorder %s1442_s24, 2  ;;  %s250_s17 = sand.u32 1, %s1438_s23  }
  0x4b   : > { %p1607_p5 = por %p173_p13, %p38_p9  ;;  %p1611_p8 = por %p179_p0, %p44_p11 }
  0x4c   : > { %s970_s20 = sshll.u32 %s250_s17, 3  ;;  %s971_s25 = sshll.u32 %s1442_s24, 7 }
  0x4d   : > { %s1758_s18 = scalar_select %p1607_p5, 1, 0 }
  0x4e   : > { %s1759_s19 = scalar_select %p1611_p8, 1, 0 }
  0x4f   : > { %s1619_s30 = scalar_lea.hbm %s1741_s0, %s971_s25  ;;  %s254_s8 = scalar_lea.vmem [#allocation2], %s970_s20 }
  0x50   : > { %s261_s9 = sshll.u32 %s254_s8, 4  ;;  %p1623_p7 = pnand %p1141_p2, %p1594_p12  ;;  %s262_s9 = int_to_ptr.vmem [resolvable:$true] %s261_s9 }
  0x51   : > { %s251_s11 = scalar_lea.sflag [#allocation3], %s250_s17  ;;  %s1342_s13 = scalar_lea.hbm %s1619_s30, 128 }
  0x52   : > { %p1343_p9 = scmp.ne.s32.totalorder %s1619_s30, %s1342_s13  ;;  %p1344_p10 = pneg %p1623_p7 }
  0x53   : > { %s1347_s26 = scalar_lea.hbm %s1741_s0, 256  ;;  %p1348_p0 = scmp.lt.s32.totalorder %s1619_s30, %s1741_s0 }
  0x54   : > { %p1345_p11 = pnand %p1344_p10, %p1343_p9  ;;  %p1349_p12 = scmp.lt.s32.totalorder %s1347_s26, %s1342_s13 }
  0x56   : > { %p1346_p13 = pneg %p1345_p11  ;;  %p1350_p2 = por %p1349_p12, %p1348_p0 }
  0x58   : > { %p1351_p4 = pnand %p1350_p2, %p1346_p13 }
  0x5a   : > { %1354 = shalt.err (!%p1351_p4)
}
  0x5b   : > { %s1355_s7 = scalar_lea.vmem %s262_s9, 128  ;;  %s1452_s17 = smov [#allocation2]  }
  0x5c   : > { %p1356_p1 = scmp.ne.s32.totalorder %s262_s9, %s1355_s7  ;;  %s1360_s8 = sshll.u32 %s1452_s17, 4  ;;  %s1361_s8 = int_to_ptr.vmem [resolvable:$false] %s1360_s8 }
  0x5d   : > { %s1362_s1 = scalar_lea.vmem %s1361_s8, 256  ;;  %p1363_p9 = scmp.lt.s32.totalorder %s262_s9, %s1361_s8 }
  0x5e   : > { %p1358_p8 = pnand %p1356_p1, %p1344_p10  ;;  %p1364_p11 = scmp.lt.s32.totalorder %s1362_s1, %s1355_s7 }
  0x60   : > { %p1359_p5 = pneg %p1358_p8  ;;  %p1365_p6 = por %p1364_p11, %p1363_p9 }
  0x62   : > { %p1366_p3 = pnand %p1365_p6, %p1359_p5 }
  0x64   : > { %1369 = shalt.err (!%p1366_p3)
}
  0x65   : > { %1132 = dma.hbm_to_vmem [thread:$0]  (!%p1623_p7), %s1619_s30, 128, %s262_s9, %s251_s11  }
  0x66   : > { %p1761_p13 = scmp.ne.s32.totalorder %s1753_s28, 0 }
  0x67   : > { %s1644_s13 = sand.u32 (!%p1761_p13), 1, %s1434_s22   ;;  %p1762_p1 = scmp.ne.s32.totalorder (!%p1761_p13), %s1757_s16, 0 }
  0x68   : > { %270 = sbr.rel (%p1761_p13) target bundleno = 1853 (0x73d), region = 44  ;;  %s973_s14 = sshll.u32 (!%p1761_p13), %s1644_s13, 3 }
  0x69   : > { %s273_s25 = scalar_lea.sflag (!%p1761_p13), [#allocation3], %s1644_s13  ;;  %s276_s1 = scalar_lea.vmem (!%p1761_p13), [#allocation2], %s973_s14 }
  0x6d   : > { %1413 = dma.done.wait (%p1762_p1), %s273_s25, 128  }
  0x6e   : > { %1415 = vsyncadd (%p1762_p1), %s273_s25, 4294967168  ;;  %p1763_p3 = scmp.eq.s32.totalorder %s1513_s27, 0 }
  0x70   : > { %1417 = dma.done.wait (%p1763_p3), [#allocation6], 448   ;;  %p1764_p4 = pmov %p1763_p3 }
  0x71   : > { %p1765_p6 = pmov %p1763_p3 }
  0x72   : > { %1419 = vsyncadd (%p1764_p4), [#allocation6], 4294966848 }
  0x73   : > { %1421 = dma.done.wait (%p1765_p6), [#allocation9], 4096   ;;  %p1766_p5 = pmov %p1763_p3 }
  0x74   : > { %v1662_v0 = vld [vmem:[%s276_s1] sm:$0xff]  ;;  %v1453_v1 = vmov 0.0   ;;  %v327_v8 = vlaneseq  ;;  %v1202_v19 = vld [vmem:[#allocation8 + $0x64] ss:$12 sps:$4 sm:$0xff]   ;;  %v1454_v26 = vmov 0   ;;  %vm1455_vm1 = vmmov 0  }
  0x75   : > { %1423 = vsyncadd (%p1766_p5), [#allocation9], 4294963200  ;;  %332 = vadd.xlane.f32.xlu0 %v1662_v0  ;;  %1044 = vmatprep.subr.bf16.mxu1 %v1453_v1  ;;  %v1190_v2 = vld [vmem:[#allocation8 + $0xac] ss:$12 sps:$4 sm:$0xff]   ;;  %v1192_v3 = vld [vmem:[#allocation8 + $0xa8] ss:$12 sps:$4 sm:$0xff]  }
  0x76   : > { %v1193_v4 = vld [vmem:[#allocation8 + $0xb0] ss:$12 sps:$4 sm:$0xff]   ;;  %v1194_v5 = vld [vmem:[#allocation8 + $0x94] ss:$12 sps:$4 sm:$0xff]   ;;  %515 = vmatprep.subr.bf16.mxu0 %v1190_v2  ;;  %v1197_v6 = vld [vmem:[#allocation8 + $0x98] ss:$12 sps:$4 sm:$0xff]   ;;  %547 = vmatprep.mubr.bf16.mxu0 %v1454_v26 }
  0x77   : > { %1045 = vmatpush3.bf16.msra.mxu1 %v1193_v4  ;;  %516 = vmatpush1.bf16.msra.mxu0 %v1192_v3  ;;  %v1196_v7 = vld [vmem:[#allocation8 + $0x90] ss:$12 sps:$4 sm:$0xff]   ;;  %v328_v9 = vand.u32 127, %v327_v8  ;;  %v1200_v17 = vld [vmem:[#allocation8 + $0x78] ss:$12 sps:$4 sm:$0xff]   ;;  %v596_v54 = vld [vmem:[#allocation7] sm:$0xff] }
  0x78   : > { %1046 = vmatprep.subr.bf16.mxu1 %v1453_v1  ;;  %517 = vmatprep.subr.bf16.mxu0 %v1194_v5  ;;  %v1198_v16 = vld [vmem:[#allocation8 + $0x7c] ss:$12 sps:$4 sm:$0xff]   ;;  %v1201_v18 = vld [vmem:[#allocation8 + $0x80] ss:$12 sps:$4 sm:$0xff]   ;;  %v1213_v28 = vld [vmem:[#allocation8 + $0x38] ss:$12 sps:$4 sm:$0xff]  }
  0x79   : > { %vm329_vm0 = vcmp.lt.s32.totalorder %v328_v9, 32  ;;  %v1204_v20 = vld [vmem:[#allocation8 + $0x60] ss:$12 sps:$4 sm:$0xff]   ;;  %v1205_v21 = vld [vmem:[#allocation8 + $0x68] ss:$12 sps:$4 sm:$0xff]   ;;  %1060 = vmatprep.mubr.msk.bf16.mxu1 %vm1455_vm1, %v1453_v1  ;;  %v598_v50 = vld [vmem:[#allocation7 + $0x10] sm:$0xff] }
  0x7a   : > { %v1669_v12 = vsel %vm329_vm0, 1.0, %v1453_v1  ;;  %v1206_v22 = vld [vmem:[#allocation8 + $0x4c] ss:$12 sps:$4 sm:$0xff]   ;;  %v1208_v23 = vld [vmem:[#allocation8 + $0x48] ss:$12 sps:$4 sm:$0xff]   ;;  %vm661_vm2 = vcmask 1043456  }
  0x7b   : > { %1047 = vmatpush3.bf16.msra.mxu1 %v1197_v6  ;;  %518 = vmatpush1.bf16.msra.mxu0 %v1196_v7  ;;  %v1209_v24 = vld [vmem:[#allocation8 + $0x50] ss:$12 sps:$4 sm:$0xff]   ;;  %v1210_v25 = vld [vmem:[#allocation8 + $0x34] ss:$12 sps:$4 sm:$0xff]   ;;  %v1216_v30 = vld [vmem:[#allocation8 + $0x18] ss:$12 sps:$4 sm:$0xff]  }
  0x7c   : > { %1048 = vmatprep.subr.bf16.mxu1 %v1453_v1  ;;  %519 = vmatprep.subr.bf16.mxu0 %v1198_v16  ;;  %v1212_v27 = vld [vmem:[#allocation8 + $0x30] ss:$12 sps:$4 sm:$0xff]   ;;  %v1217_v31 = vld [vmem:[#allocation8 + $0x20] ss:$12 sps:$4 sm:$0xff]   ;;  %v1221_v34 = vld [vmem:[#allocation8 + $0x8] ss:$12 sps:$4 sm:$0xff]  }
  0x7d   : > { %v1214_v29 = vld [vmem:[#allocation8 + $0x1c] ss:$12 sps:$4 sm:$0xff]   ;;  %v1218_v32 = vld [vmem:[#allocation8 + $0x4] ss:$12 sps:$4 sm:$0xff]   ;;  %v1220_v33 = vld [vmem:[#allocation8] ss:$12 sps:$4 sm:$0xff]  }
  0x7e   : > { %v980_v39 = vld [vmem:[#allocation5] ss:$0 sm:$0xff]  ;;  %v981_v41 = vld [vmem:[#allocation5 + $0x1] ss:$0 sm:$0xff]  ;;  %v597_v47 = vld [vmem:[#allocation7 + $0x8] sm:$0xff]  ;;  %vm644_vm3 = vcmask 64512  }
  0x7f   : > { %520 = vmatpush1.bf16.msra.mxu0 %v1200_v17  ;;  %1049 = vmatpush3.bf16.msra.mxu1 %v1201_v18  ;;  %v1226_v16 = vld [vmem:[#allocation10 + $0x18] sm:$0xff]   ;;  %v1227_v17 = vld [vmem:[#allocation10 + $0x10] sm:$0xff]   ;;  %v1228_v18 = vld [vmem:[#allocation10 + $0x8] sm:$0xff]   ;;  %s1019_s30 = sshll.u32 %s1513_s27, 7  ;;  %s320_s9 = scalar_lea.vmem [#allocation11], %s973_s14 }
  0x80   : > { %1050 = vmatprep.subr.bf16.mxu1 %v1453_v1  ;;  %521 = vmatprep.subr.bf16.mxu0 %v1202_v19  ;;  %s855_s10 = sshll.u32 %s320_s9, 4  ;;  %s853_s20 = scalar_lea.hbm %s1747_s6, %s1019_s30  ;;  %s856_s10 = int_to_ptr.vmem [resolvable:$true] %s855_s10 }
  0x81   : > { %s842_s29 = scalar_lea.sflag [#allocation4], %s1644_s13  ;;  %s1370_s7 = scalar_lea.vmem %s856_s10, 128 }
  0x82   : > { %p1371_p8 = scmp.ne.s32.totalorder %s856_s10, %s1370_s7  ;;  %p1767_p7 = scmp.ne.s32.totalorder %s1758_s18, 0 }
  0x83   : > { %522 = vmatpush1.bf16.msra.mxu0 %v1204_v20  ;;  %1051 = vmatpush3.bf16.msra.mxu1 %v1205_v21  ;;  %s1456_s17 = smov [#allocation11]  }
  0x84   : > { %523 = vmatprep.subr.bf16.mxu0 %v1206_v22  ;;  %1052 = vmatprep.subr.bf16.mxu1 %v1453_v1  ;;  %p1372_p10 = pnand %p1371_p8, %p1767_p7  ;;  %s1374_s27 = sshll.u32 %s1456_s17, 4  ;;  %s1375_s27 = int_to_ptr.vmem [resolvable:$false] %s1374_s27 }
  0x85   : > { %s1376_s8 = scalar_lea.vmem %s1375_s27, 256  ;;  %p1377_p12 = scmp.lt.s32.totalorder %s856_s10, %s1375_s27 }
  0x86   : > { %p1373_p0 = pneg %p1372_p10  ;;  %p1378_p2 = scmp.lt.s32.totalorder %s1376_s8, %s1370_s7 }
  0x87   : > { %524 = vmatpush1.bf16.msra.mxu0 %v1208_v23  ;;  %1053 = vmatpush3.bf16.msra.mxu1 %v1209_v24  ;;  %v1229_v23 = vld [vmem:[#allocation10] sm:$0xff]  }
  0x88   : > { %525 = vmatprep.subr.bf16.mxu0 %v1210_v25  ;;  %1054 = vmatprep.subr.bf16.mxu1 %v1453_v1  ;;  %p1379_p9 = por %p1378_p2, %p1377_p12 }
  0x8a   : > { %p1380_p11 = pnand %p1379_p9, %p1373_p0 }
  0x8b   : > { %526 = vmatpush1.bf16.msra.mxu0 %v1212_v27  ;;  %1055 = vmatpush3.bf16.msra.mxu1 %v1213_v28 }
  0x8c   : > { %527 = vmatprep.subr.bf16.mxu0 %v1214_v29  ;;  %1056 = vmatprep.subr.bf16.mxu1 %v1453_v1  ;;  %v1007_v29 = vld [vmem:[%s1746_s5] ss:$0 sm:$0xff] }
  0x8f   : > { %528 = vmatpush1.bf16.msra.mxu0 %v1216_v30  ;;  %1057 = vmatpush3.bf16.msra.mxu1 %v1217_v31 }
  0x90   : > { %529 = vmatprep.subr.bf16.mxu0 %v1218_v32  ;;  %1058 = vmatprep.subr.bf16.mxu1 %v1453_v1 }
  0x93   : > { %530 = vmatpush1.bf16.msra.mxu0 %v1220_v33  ;;  %1059 = vmatpush3.bf16.msra.mxu1 %v1221_v34 }
  0x94   : > { %1064 = vmatprep.subr.bf16.mxu1 %v1453_v1  ;;  %1076 = vmatprep.subr.bf16.mxu0 %v1453_v1 }
  0xfe   : > { %v333_v10 = vpop.xlane.xlu0 %332 }
  0xff   : > { %v334_v11 = vmul.f32 0.03125, %v333_v10 }
 0x101   : > { %v335_v13 = vsub.f32 %v1662_v0, %v334_v11  ;;  %v1222_v11 = vld [vmem:[#allocation10 + $0x38] sm:$0xff]  }
 0x103   : > { %v336_v14 = vmul.f32 %v1669_v12, %v335_v13  ;;  %v1223_v13 = vld [vmem:[#allocation10 + $0x30] sm:$0xff]  }
 0x105   : > { %v337_v15 = vmul.f32 %v336_v14, %v336_v14 }
 0x107   : > { %338 = vadd.xlane.f32.xlu0 %v337_v15  ;;  %v1225_v15 = vld [vmem:[#allocation10 + $0x20] sm:$0xff]  }
 0x190   : > { %v339_v35 = vpop.xlane.xlu0 %338 }
 0x191   : > { %v340_v36 = vmul.f32 0.03125, %v339_v35 }
 0x193   : > { %v341_v37 = vadd.f32 1e-05, %v340_v36 }
 0x195   : > { %1230 = vrsqrt.f32 %v341_v37 }
 0x1a2   : > { %v1231_v38 = vpop.eup %1230 }
 0x1a3   : > { %v343_v40 = vmul.f32 %v1231_v38, %v336_v14  ;;  %v1224_v14 = vld [vmem:[#allocation10 + $0x28] sm:$0xff]  }
 0x1a5   : > { %v348_v42 = vmul.f32 %v980_v39, %v343_v40 }
 0x1a7   : > { %v353_v43 = vadd.f32 %v981_v41, %v348_v42 }
 0x1a9   : > { %v354_v44 = vpack.c.bf16 %v353_v43, %v353_v43  ;;  %v1016_v43 = vld [vmem:[#allocation5 + $0x2] ss:$0 sm:$0xff] }
 0x1ab   : > { %548 = vmatmul.mubr.bf16.vlgmr.msra.gmra.mxu0 %v354_v44  ;;  %1061 = vmatmul.mubr.bf16.vlgmr.msra.gmra.mxu1 %v354_v44 }
 0x1ac   : > { %1066 = vmatprep.mubr.msk.bf16.mxu1 %vm1455_vm1, %v1453_v1  ;;  %1092 = vmatprep.mubr.msk.bf16.mxu0 %vm1455_vm1, %v1453_v1 }
 0x1ad   : > { %1077 = vmatpush3.bf16.msra.mxu0 %v1222_v11 }
 0x1ae   : > { %1078 = vmatprep.subr.bf16.mxu0 %v1453_v1 }
 0x1b1   : > { %1079 = vmatpush3.bf16.msra.mxu0 %v1223_v13 }
 0x1b2   : > { %1080 = vmatprep.subr.bf16.mxu0 %v1453_v1 }
 0x1b5   : > { %1081 = vmatpush3.bf16.msra.mxu0 %v1224_v14 }
 0x1b6   : > { %1082 = vmatprep.subr.bf16.mxu0 %v1453_v1 }
 0x1b9   : > { %1083 = vmatpush3.bf16.msra.mxu0 %v1225_v15 }
 0x1ba   : > { %1084 = vmatprep.subr.bf16.mxu0 %v1453_v1 }
 0x1bd   : > { %1085 = vmatpush3.bf16.msra.mxu0 %v1226_v16 }
 0x1be   : > { %1086 = vmatprep.subr.bf16.mxu0 %v1453_v1 }
 0x1c1   : > { %1087 = vmatpush3.bf16.msra.mxu0 %v1227_v17 }
 0x1c2   : > { %1088 = vmatprep.subr.bf16.mxu0 %v1453_v1 }
 0x1c5   : > { %1089 = vmatpush3.bf16.msra.mxu0 %v1228_v18 }
 0x1c6   : > { %1090 = vmatprep.subr.bf16.mxu0 %v1453_v1 }
 0x1c9   : > { %1091 = vmatpush3.bf16.msra.mxu0 %v1229_v23 }
 0x26b   : > { %v549_v45 = vpop.f32.mrf.mxu0  ;;  %v590_v46 = vpop.f32.mrf.mxu1 }
 0x26c   : > { %v601_v56 = vadd.f32 %v598_v50, %v590_v46  ;;  %v599_v59 = vadd.f32 %v596_v54, %v549_v45  ;;  %v1017_v45 = vld [vmem:[#allocation5 + $0x3] ss:$0 sm:$0xff] }
 0x26d   : > { %v551_v48 = vpop.f32.mrf.mxu0  ;;  %v1062_v49 = vpop.f32.mrf.mxu1 }
 0x26e   : > { %v600_v51 = vadd.f32 %v597_v47, %v551_v48  ;;  %v657_v60 = vpack.c.bf16 %v601_v56, %v601_v56  ;;  %v602_v61 = vpack.c.bf16 %v599_v59, %v599_v59 }
 0x26f   : > { %v553_v52 = vpop.f32.mrf.mxu0  ;;  %v593_v53 = vpop.f32.mrf.mxu1 }
 0x270   : > { %v603_v55 = vpack.c.bf16 %v600_v51, %v600_v51  ;;  %v663_v62 = vsel %vm661_vm2, %v657_v60, 0 }
 0x271   : > { %v554_v57 = vpop.f32.mrf.mxu0  ;;  %v1063_v58 = vpop.f32.mrf.mxu1 }
 0x272   : > { %1065 = vmatpush3.bf16.xpose.msra.mxu1 %v603_v55 }
 0x273   : > { %1070 = vmatprep.subr.bf16.mxu1 %v1453_v1 }
 0x279   : > { %1067 = vmatmul.mubr.bf16.vlgmr.msra.gmra.mxu1 %v602_v61 }
 0x27a   : > { %1071 = vmatpush3.bf16.msra.mxu1 %v663_v62  ;;  %1072 = vmatprep.mubr.msk.bf16.mxu1 %vm1455_vm1, %v1453_v1 }
 0x339   : > { %v638_v63 = vpop.f32.mrf.mxu1 }
 0x33a   : > { %v645_v2 = vsel %vm644_vm3, %v638_v63, -inf }
 0x33b   : > { %646 = vmax.xlane.f32.xlu1 %v645_v2  ;;  %v1068_v3 = vpop.f32.mrf.mxu1 }
 0x33d   : > { %v641_v4 = vpop.f32.mrf.mxu1 }
 0x33f   : > { %v1069_v5 = vpop.f32.mrf.mxu1 }
 0x3c4   : > { %v647_v6 = vpop.xlane.xlu1 %646 }
 0x3c5   : > { %v648_v7 = vsub.f32 %v638_v63, %v647_v6 }
 0x3c7   : > { %v649_v8 = vmul.f32 1.442695, %v648_v7 }
 0x3c9   : > { %1232 = vpow2.f32 %v649_v8 }
 0x3d6   : > { %v1233_v9 = vpop.eup %1232 }
 0x3d7   : > { %v651_v10 = vsel %vm644_vm3, %v1233_v9, 0.0 }
 0x3d8   : > { %652 = vadd.xlane.f32.xlu1 %v651_v10 }
 0x461   : > { %v653_v19 = vpop.xlane.xlu1 %652 }
 0x462   : > { %1234 = vrcp.f32 %v653_v19 }
 0x46f   : > { %v1235_v20 = vpop.eup %1234 }
 0x470   : > { %v655_v21 = vmul.f32 %v1235_v20, %v1233_v9 }
 0x472   : > { %v656_v22 = vpack.c.bf16 %v655_v21, %v655_v21 }
 0x474   : > { %1073 = vmatmul.mubr.msk.bf16.vlgmr.msra.gmra.mxu1 %vm644_vm3, %v656_v22 }
 0x534   : > { %v699_v24 = vpop.f32.mrf.mxu1 }
 0x535   : > { %v705_v25 = vpack.c.bf16 %v699_v24, %v699_v24 }
 0x536   : > { %v1074_v26 = vpop.f32.mrf.mxu1 }
 0x537   : > { %1093 = vmatmul.mubr.bf16.vlgmr.msra.gmra.mxu0 %v705_v25 }
 0x538   : > { %v702_v27 = vpop.f32.mrf.mxu1 }
 0x53a   : > { %v1075_v28 = vpop.f32.mrf.mxu1 }
 0x5f7   : > { %v811_v1 = vpop.f32.mrf.mxu0 }
 0x5f8   : > { %v812_v30 = vadd.f32 %v1007_v29, %v811_v1 }
 0x5f9   : > { %v1094_v31 = vpop.f32.mrf.mxu0 }
 0x5fa   : > { %817 = vadd.xlane.f32.xlu0 %v812_v30 }
 0x5fb   : > { %v814_v32 = vpop.f32.mrf.mxu0 }
 0x5fd   : > { %v1095_v33 = vpop.f32.mrf.mxu0 }
 0x683   : > { %v818_v34 = vpop.xlane.xlu0 %817 }
 0x684   : > { %v819_v35 = vmul.f32 0.03125, %v818_v34 }
 0x686   : > { %v820_v36 = vsub.f32 %v812_v30, %v819_v35 }
 0x688   : > { %v821_v37 = vmul.f32 %v1669_v12, %v820_v36 }
 0x68a   : > { %v822_v38 = vmul.f32 %v821_v37, %v821_v37 }
 0x68c   : > { %823 = vadd.xlane.f32.xlu1 %v822_v38 }
 0x715   : > { %v824_v39 = vpop.xlane.xlu1 %823 }
 0x716   : > { %v825_v40 = vmul.f32 0.03125, %v824_v39 }
 0x718   : > { %v826_v41 = vadd.f32 1e-05, %v825_v40 }
 0x71a   : > { %1236 = vrsqrt.f32 %v826_v41 }
 0x727   : > { %v1237_v42 = vpop.eup %1236 }
 0x728   : > { %v828_v44 = vmul.f32 %v1237_v42, %v821_v37 }
 0x72a   : > { %v833_v46 = vmul.f32 %v1016_v43, %v828_v44 }
 0x72c   : > { %v838_v47 = vadd.f32 %v1017_v45, %v833_v46 }
 0x72e   : > { %v839_v12 = vadd.f32 %v838_v47, %v1662_v0 }
 0x730   : > { %840 = vst [vmem:[%s320_s9] sm:$0xff] %v839_v12 }
 0x731   : > { %1383 = shalt.err (!%p1380_p11)
}
 0x732   : > { %s1384_s14 = scalar_lea.hbm %s853_s20, 128  ;;  %s1388_s1 = scalar_lea.hbm %s1747_s6, 256 }
 0x733   : > { %p1385_p13 = scmp.ne.s32.totalorder %s853_s20, %s1384_s14  ;;  %p1389_p4 = scmp.lt.s32.totalorder %s853_s20, %s1747_s6 }
 0x734   : > { %p1390_p6 = scmp.lt.s32.totalorder %s1388_s1, %s1384_s14 }
 0x735   : > { %p1386_p1 = pnand %p1385_p13, %p1767_p7 }
 0x736   : > { %p1391_p5 = por %p1390_p6, %p1389_p4 }
 0x737   : > { %p1387_p3 = pneg %p1386_p1 }
 0x739   : > { %p1392_p8 = pnand %p1391_p5, %p1387_p3 }
 0x73b   : > { %1395 = shalt.err (!%p1392_p8)
}
 0x73c   : > { %1114 = dma.vmem_to_hbm [thread:$0]  (%p1767_p7), %s856_s10, 128, %s853_s20, %s842_s29  }
 0x73d PF: > { %s867_s30 = sand.u32 1, %s1430_s21   ;;  %p1768_p10 = scmp.ne.s32.totalorder %s1759_s19, 0 }
 0x73e   : > { %p1769_p0 = scmp.ge.s32.totalorder %s1442_s24, 2  ;;  %s868_s9 = scalar_lea.sflag [#allocation4], %s867_s30 }
 0x740   : > { %p1134_p12 = pnand %p1769_p0, %p1768_p10 }
 0x742   : > { %p1135_p2 = pneg %p1134_p12 }
 0x744   : > { %1425 = dma.done.wait (%p1135_p2), %s868_s9, 128  }
 0x745   : > { %1427 = vsyncadd (%p1135_p2), %s868_s9, 4294967168  ;;  %p21_p9 = scmp.ge.s32.totalorder %s1581_s12, 4   ;;  %s1770_s21 = smov %s1434_s22 }
 0x746   : > { %s1771_s22 = smov %s1438_s23  ;;  %s1772_s23 = smov %s1592_s15 }
 0x747   : > { %s1773_s24 = smov %s1581_s12  ;;  %23 = sbr.rel (!%p21_p9) target bundleno = 9 (0x9), region = 105 }
 0x74c   :  { %873 = vsyncpa [#allocation3], 1 }
 0x74d   :  { %875 = vsyncpa [#allocation3 + $0x1], 1 }
 0x74e   :  { %876 = vsyncpa [#allocation6], 1 }
 0x74f   :  { %877 = vsyncpa [#allocation9], 1 }
 0x750   :  { %878 = vsyncpa [#allocation4], 1 }
 0x751   :  { %880 = vsyncpa [#allocation4 + $0x1], 1 }

</bundles_post_ra>
